<compile_context>
chip_gen: v7x
topology: tpu7x:2x2x1
jax: 0.10.0
libtpu: 0.0.40
codegen_flags: <defaults>
</compile_context>

<pallas_src>
import functools

import jax
import jax.numpy as jnp
from jax.experimental import pallas as pl
from jax.experimental.pallas import tpu as pltpu


def _silu(x):
    return x * jax.nn.sigmoid(x)


# ----------------------------------------------------------------------------
# Fused per-(batch, layer) kernel
# ----------------------------------------------------------------------------
def _mamba_kernel(
    x_ref,          # (1, S, input_dim)  one sequence of the batch
    embw_ref,       # (input_dim, D)
    embb_ref,       # (1, D)
    convw_ref,      # (1, 3D, D)  packed conv weight rows = [k=0 | k=1 | k=2]
    convb_ref,      # (1, 1, D)
    lng_ref,        # (1, 1, D)
    lnb_ref,        # (1, 1, D)
    w1_ref, b1_ref,  # (1, D, D), (1, 1, D)   ssm.linear1
    w2_ref, b2_ref,  # (1, D, D), (1, 1, D)   ssm.linear2
    w3_ref, b3_ref,  # (1, D, D), (1, 1, D)   block.linear
    outw_ref,       # (D, 1)
    outb_ref,       # (1, 1)
    o_ref,          # (1, 1, 1)
    h_ref,          # VMEM scratch (S, D): activation carried across layer axis
    *, num_layers, seq_len,
):
    layer = pl.program_id(1)
    S = seq_len
    D = embw_ref.shape[1]

    # --- embedding: only on the first layer step of this sequence ----------
    @pl.when(layer == 0)
    def _():
        x = x_ref[0]                                               # (S, input_dim)
        h_ref[...] = (jnp.dot(x, embw_ref[...],
                              preferred_element_type=jnp.float32)
                      + embb_ref[...])

    h = h_ref[...]                                                 # (S, D)

    # --- Conv1d(k=3, p=1): zero-padded shifted copies + 3 small matmuls ----
    zero_row = jnp.zeros((1, D), jnp.float32)
    h_prev = jnp.concatenate([zero_row, h[:S - 1, :]], axis=0)     # x[t-1]
    h_next = jnp.concatenate([h[1:, :], zero_row], axis=0)         # x[t+1]

    cw = convw_ref[0]                                              # (3D, D)
    conv = (jnp.dot(h_prev, cw[0:D, :], preferred_element_type=jnp.float32)
            + jnp.dot(h, cw[D:2 * D, :], preferred_element_type=jnp.float32)
            + jnp.dot(h_next, cw[2 * D:3 * D, :],
                      preferred_element_type=jnp.float32)
            + convb_ref[0])

    # --- residual + LayerNorm (two-pass variance, matches torch) + SiLU ----
    y = conv + h
    mean = jnp.mean(y, axis=-1, keepdims=True)
    yc = y - mean
    var = jnp.mean(yc * yc, axis=-1, keepdims=True)
    y = yc * jax.lax.rsqrt(var + 1e-5)
    y = y * lng_ref[0] + lnb_ref[0]
    y = _silu(y)

    # --- SelectiveSSM: linear1 -> SiLU -> linear2, then block.linear -------
    y = _silu(jnp.dot(y, w1_ref[0], preferred_element_type=jnp.float32)
              + b1_ref[0])
    y = jnp.dot(y, w2_ref[0], preferred_element_type=jnp.float32) + b2_ref[0]
    h_new = jnp.dot(y, w3_ref[0], preferred_element_type=jnp.float32) + b3_ref[0]
    h_ref[...] = h_new

    # --- output head on the last token, only after the final layer ---------
    @pl.when(layer == num_layers - 1)
    def _():
        last = h_new[S - 1:S, :]                                   # (1, D)
        out = (jnp.dot(last, outw_ref[...],
                       preferred_element_type=jnp.float32)
               + outb_ref[...])                                    # (1, 1)
        o_ref[0] = out.astype(o_ref.dtype)


def mamba_forward(params, x):
    """x: (B, S, input_dim) float32 -> (B, 1) float32."""
    B, S, input_dim = x.shape
    D = params["emb_w"].shape[1]
    L = int(params["conv_w"].shape[0])

    def layer_spec(shape):
        nd = len(shape)
        return pl.BlockSpec((1,) + shape,
                            lambda b, l, _nd=nd: (l,) + (0,) * _nd)

    def full_spec(a):
        nd = a.ndim
        return pl.BlockSpec(a.shape, lambda b, l, _nd=nd: (0,) * _nd)

    args = (
        x,
        params["emb_w"], params["emb_b"],
        params["conv_w"], params["conv_b"],
        params["ln_g"], params["ln_b"],
        params["w1"], params["b1"],
        params["w2"], params["b2"],
        params["w3"], params["b3"],
        params["out_w"], params["out_b"],
    )

    in_specs = [
        pl.BlockSpec((1, S, input_dim), lambda b, l: (b, 0, 0)),   # x
        full_spec(params["emb_w"]), full_spec(params["emb_b"]),
        layer_spec((3 * D, D)),            # conv_w
        layer_spec((1, D)),                # conv_b
        layer_spec((1, D)),                # ln_g
        layer_spec((1, D)),                # ln_b
        layer_spec((D, D)), layer_spec((1, D)),   # w1, b1
        layer_spec((D, D)), layer_spec((1, D)),   # w2, b2
        layer_spec((D, D)), layer_spec((1, D)),   # w3, b3
        full_spec(params["out_w"]), full_spec(params["out_b"]),
    ]
    out_specs = pl.BlockSpec((1, 1, 1), lambda b, l: (b, 0, 0))

    # Advisory cost estimate for XLA scheduling around the fused call.
    flops = B * 2 * S * input_dim * D                 # embedding
    flops += B * L * (6 * 2 * S * D * D)              # 3 conv + 3 linear matmuls
    flops += B * 2 * D                                # head
    transcendentals = B * L * 3 * S * D               # 3 SiLU sigmoids / layer
    bytes_accessed = (sum(int(a.size) * a.dtype.itemsize for a in args)
                      + B * 4)

    kernel = functools.partial(_mamba_kernel, num_layers=L, seq_len=S)

    out = pl.pallas_call(
        kernel,
        out_shape=jax.ShapeDtypeStruct((B, 1, 1), jnp.float32),
        grid=(B, L),
        in_specs=in_specs,
        out_specs=out_specs,
        scratch_shapes=[pltpu.VMEM((S, D), jnp.float32)],
        compiler_params=pltpu.CompilerParams(
            dimension_semantics=("parallel", "arbitrary")),
        cost_estimate=pl.CostEstimate(
            flops=flops,
            transcendentals=transcendentals,
            bytes_accessed=bytes_accessed),
    )(*args)
    return out.reshape(B, 1)


@jax.jit
def mamba_model_forward(params, x):
    return mamba_forward(params, x)


# ----------------------------------------------------------------------------
# Parameter init (deterministic, PyTorch-style uniform(-1/sqrt(fan_in), ...))
# Per-layer weights are stacked along a leading L axis; Linear weights are
# stored transposed (in, out); Conv1d weight (out, in, 3) is packed to (3D, D).
# ----------------------------------------------------------------------------
def _uniform(key, shape, fan_in):
    bound = 1.0 / jnp.sqrt(jnp.float32(fan_in))
    return jax.random.uniform(key, shape, jnp.float32, -bound, bound)


def init_params(key, input_dim, d_model, num_layers):
    D = d_model
    keys = jax.random.split(key, 2 + num_layers)

    ke1, ke2 = jax.random.split(keys[0])
    params = {
        "emb_w": _uniform(ke1, (input_dim, D), input_dim),
        "emb_b": _uniform(ke2, (1, D), input_dim),
    }
    ko1, ko2 = jax.random.split(keys[1])
    params["out_w"] = _uniform(ko1, (D, 1), D)
    params["out_b"] = _uniform(ko2, (1, 1), D)

    conv_w, conv_b, ln_g, ln_b = [], [], [], []
    w1, b1, w2, b2, w3, b3 = [], [], [], [], [], []
    for layer in range(num_layers):
        ks = jax.random.split(keys[2 + layer], 8)
        # Conv1d(D, D, 3): PyTorch weight (out, in, k) -> (k, in, out) -> (3D, D)
        cw = _uniform(ks[0], (D, D, 3), D * 3)
        conv_w.append(jnp.transpose(cw, (2, 1, 0)).reshape(3 * D, D))
        conv_b.append(_uniform(ks[1], (1, D), D * 3))
        ln_g.append(jnp.ones((1, D), jnp.float32))
        ln_b.append(jnp.zeros((1, D), jnp.float32))
        w1.append(_uniform(ks[2], (D, D), D)); b1.append(_uniform(ks[3], (1, D), D))
        w2.append(_uniform(ks[4], (D, D), D)); b2.append(_uniform(ks[5], (1, D), D))
        w3.append(_uniform(ks[6], (D, D), D)); b3.append(_uniform(ks[7], (1, D), D))

    stack = lambda xs: jnp.stack(xs, axis=0)
    params.update(
        conv_w=stack(conv_w), conv_b=stack(conv_b),
        ln_g=stack(ln_g), ln_b=stack(ln_b),
        w1=stack(w1), b1=stack(b1),
        w2=stack(w2), b2=stack(b2),
        w3=stack(w3), b3=stack(b3),
    )
    return params


# ----------------------------------------------------------------------------
# Pure-JAX reference (mirrors the PyTorch forward exactly) for validation
# ----------------------------------------------------------------------------
def reference_forward(params, x):
    def silu(v):
        return v * jax.nn.sigmoid(v)

    B, S, _ = x.shape
    D = params["emb_w"].shape[1]
    L = params["conv_w"].shape[0]

    h = x @ params["emb_w"] + params["emb_b"]
    for layer in range(L):
        cw3 = params["conv_w"][layer].reshape(3, D, D)
        residual = h
        h_prev = jnp.pad(h, ((0, 0), (1, 0), (0, 0)))[:, :-1, :]
        h_next = jnp.pad(h, ((0, 0), (0, 1), (0, 0)))[:, 1:, :]
        conv = (h_prev @ cw3[0] + h @ cw3[1] + h_next @ cw3[2]
                + params["conv_b"][layer])
        y = conv + residual
        mean = jnp.mean(y, axis=-1, keepdims=True)
        var = jnp.mean((y - mean) ** 2, axis=-1, keepdims=True)
        y = (y - mean) * jax.lax.rsqrt(var + 1e-5)
        y = y * params["ln_g"][layer] + params["ln_b"][layer]
        y = silu(y)
        y = silu(y @ params["w1"][layer] + params["b1"][layer])
        y = y @ params["w2"][layer] + params["b2"][layer]
        h = y @ params["w3"][layer] + params["b3"][layer]
    return h[:, -1, :] @ params["out_w"] + params["out_b"]


if __name__ == "__main__":
    # Small shapes consistent with the module's forward:
    # x: (batch=2, seq_len=8, input_dim=16), d_model=32, num_layers=2
    B, S, INPUT_DIM, D_MODEL, NUM_LAYERS = 2, 8, 16, 32, 2

    key = jax.random.PRNGKey(0)
    k_param, k_data = jax.random.split(key)
    params = init_params(k_param, INPUT_DIM, D_MODEL, NUM_LAYERS)
    x = jax.random.normal(k_data, (B, S, INPUT_DIM), jnp.float32)

    out = mamba_model_forward(params, x)
    out = jax.block_until_ready(out)
    assert out.shape == (B, 1), out.shape

    ref = reference_forward(params, x)
    assert jnp.allclose(out, ref, atol=1e-3, rtol=1e-3), (out, ref)

    print("KERNEL_OK")
</pallas_src>

<mosaic_0001>
module attributes {stable_mosaic.version = 11 : i64} {
  func.func @_mamba_kernel(%arg0: i32, %arg1: i32, %arg2: memref<1x8x16xf32, #tpu.memory_space<vmem>>, %arg3: memref<16x32xf32, #tpu.memory_space<vmem>>, %arg4: memref<1x32xf32, #tpu.memory_space<vmem>>, %arg5: memref<1x96x32xf32, #tpu.memory_space<vmem>>, %arg6: memref<1x1x32xf32, #tpu.memory_space<vmem>>, %arg7: memref<1x1x32xf32, #tpu.memory_space<vmem>>, %arg8: memref<1x1x32xf32, #tpu.memory_space<vmem>>, %arg9: memref<1x32x32xf32, #tpu.memory_space<vmem>>, %arg10: memref<1x1x32xf32, #tpu.memory_space<vmem>>, %arg11: memref<1x32x32xf32, #tpu.memory_space<vmem>>, %arg12: memref<1x1x32xf32, #tpu.memory_space<vmem>>, %arg13: memref<1x32x32xf32, #tpu.memory_space<vmem>>, %arg14: memref<1x1x32xf32, #tpu.memory_space<vmem>>, %arg15: memref<32x1xf32, #tpu.memory_space<vmem>>, %arg16: memref<1x1xf32, #tpu.memory_space<vmem>>, %arg17: memref<1x1x1xf32, #tpu.memory_space<vmem>>, %arg18: memref<8x32xf32, #tpu.memory_space<vmem>>) attributes {dimension_semantics = [#tpu.dimension_semantics<parallel>, #tpu.dimension_semantics<arbitrary>], iteration_bounds = array<i64: 2, 2>, scalar_prefetch = 0 : i64, scratch_operands = 1 : i64, tpu.core_type = #tpu.core_type<tc>, window_params = [{transform_indices = @transform_0, window_bounds = array<i64: 1, 8, 16>}, {pipeline_mode = #tpu.pipeline_mode<synchronous>, transform_indices = @transform_1, window_bounds = array<i64: 16, 32>}, {pipeline_mode = #tpu.pipeline_mode<synchronous>, transform_indices = @transform_2, window_bounds = array<i64: 1, 32>}, {transform_indices = @transform_3, window_bounds = array<i64: 1, 96, 32>}, {transform_indices = @transform_4, window_bounds = array<i64: 1, 1, 32>}, {transform_indices = @transform_5, window_bounds = array<i64: 1, 1, 32>}, {transform_indices = @transform_6, window_bounds = array<i64: 1, 1, 32>}, {transform_indices = @transform_7, window_bounds = array<i64: 1, 32, 32>}, {transform_indices = @transform_8, window_bounds = array<i64: 1, 1, 32>}, {transform_indices = @transform_9, window_bounds = array<i64: 1, 32, 32>}, {transform_indices = @transform_10, window_bounds = array<i64: 1, 1, 32>}, {transform_indices = @transform_11, window_bounds = array<i64: 1, 32, 32>}, {transform_indices = @transform_12, window_bounds = array<i64: 1, 1, 32>}, {pipeline_mode = #tpu.pipeline_mode<synchronous>, transform_indices = @transform_13, window_bounds = array<i64: 32, 1>}, {pipeline_mode = #tpu.pipeline_mode<synchronous>, transform_indices = @transform_14, window_bounds = array<i64: 1, 1>}, {transform_indices = @transform_15, window_bounds = array<i64: 1, 1, 1>}]} {
    %c0_i32 = arith.constant 0 : i32
    %0 = arith.cmpi eq, %arg1, %c0_i32 : i32
    %1 = arith.extui %0 : i1 to i32
    %c0_i32_0 = arith.constant 0 : i32
    %2 = arith.cmpi ne, %1, %c0_i32_0 : i32
    scf.if %2 {
      %c0_48 = arith.constant 0 : index
      %c0_49 = arith.constant 0 : index
      %c0_50 = arith.constant 0 : index
      %85 = vector.load %arg2[%c0_48, %c0_49, %c0_50] : memref<1x8x16xf32, #tpu.memory_space<vmem>>, vector<1x8x16xf32>
      %86 = vector.shape_cast %85 : vector<1x8x16xf32> to vector<8x16xf32>
      %c0_51 = arith.constant 0 : index
      %c0_52 = arith.constant 0 : index
      %87 = vector.load %arg3[%c0_51, %c0_52] : memref<16x32xf32, #tpu.memory_space<vmem>>, vector<16x32xf32>
      %cst_53 = arith.constant dense<0.000000e+00> : vector<8x32xf32>
      %88 = tpu.matmul %86, %87, %cst_53 {dimension_numbers = #tpu.dot_dimension_numbers<[1], [0], [0], [1], [0, 0, 1, 1], [], []>} : vector<8x16xf32>, vector<16x32xf32>, vector<8x32xf32> -> vector<8x32xf32>
      %c0_54 = arith.constant 0 : index
      %c0_55 = arith.constant 0 : index
      %89 = vector.load %arg4[%c0_54, %c0_55] : memref<1x32xf32, #tpu.memory_space<vmem>>, vector<1x32xf32>
      %90 = vector.broadcast %89 : vector<1x32xf32> to vector<8x32xf32>
      %91 = arith.addf %88, %90 : vector<8x32xf32>
      %c0_56 = arith.constant 0 : index
      %c0_57 = arith.constant 0 : index
      %92 = vector.load %arg18[%c0_56, %c0_57] : memref<8x32xf32, #tpu.memory_space<vmem>>, vector<8x32xf32>
      tpu.vector_store %arg18[%c0_56, %c0_57], %91 {strides = array<i32>} : memref<8x32xf32, #tpu.memory_space<vmem>>, vector<8x32xf32>,
    } else {
    }
    %c0 = arith.constant 0 : index
    %c0_1 = arith.constant 0 : index
    %3 = vector.load %arg18[%c0, %c0_1] : memref<8x32xf32, #tpu.memory_space<vmem>>, vector<8x32xf32>
    %cst = arith.constant 0.000000e+00 : f32
    %4 = vector.broadcast %cst : f32 to vector<1x32xf32>
    %5 = vector.extract_strided_slice %3 {offsets = [0, 0], sizes = [7, 32], strides = [1, 1]} : vector<8x32xf32> to vector<7x32xf32>
    %6 = tpu.concatenate %4, %5 in 0 : vector<1x32xf32>, vector<7x32xf32> -> vector<8x32xf32>
    %7 = vector.extract_strided_slice %3 {offsets = [1, 0], sizes = [7, 32], strides = [1, 1]} : vector<8x32xf32> to vector<7x32xf32>
    %8 = tpu.concatenate %7, %4 in 0 : vector<7x32xf32>, vector<1x32xf32> -> vector<8x32xf32>
    %c0_2 = arith.constant 0 : index
    %c0_3 = arith.constant 0 : index
    %c0_4 = arith.constant 0 : index
    %9 = vector.load %arg5[%c0_2, %c0_3, %c0_4] : memref<1x96x32xf32, #tpu.memory_space<vmem>>, vector<1x96x32xf32>
    %10 = vector.shape_cast %9 : vector<1x96x32xf32> to vector<96x32xf32>
    %11 = vector.extract_strided_slice %10 {offsets = [0, 0], sizes = [32, 32], strides = [1, 1]} : vector<96x32xf32> to vector<32x32xf32>
    %cst_5 = arith.constant dense<0.000000e+00> : vector<8x32xf32>
    %12 = tpu.matmul %6, %11, %cst_5 {dimension_numbers = #tpu.dot_dimension_numbers<[1], [0], [0], [1], [0, 0, 1, 1], [], []>} : vector<8x32xf32>, vector<32x32xf32>, vector<8x32xf32> -> vector<8x32xf32>
    %13 = vector.extract_strided_slice %10 {offsets = [32, 0], sizes = [32, 32], strides = [1, 1]} : vector<96x32xf32> to vector<32x32xf32>
    %cst_6 = arith.constant dense<0.000000e+00> : vector<8x32xf32>
    %14 = tpu.matmul %3, %13, %cst_6 {dimension_numbers = #tpu.dot_dimension_numbers<[1], [0], [0], [1], [0, 0, 1, 1], [], []>} : vector<8x32xf32>, vector<32x32xf32>, vector<8x32xf32> -> vector<8x32xf32>
    %15 = arith.addf %12, %14 : vector<8x32xf32>
    %16 = vector.extract_strided_slice %10 {offsets = [64, 0], sizes = [32, 32], strides = [1, 1]} : vector<96x32xf32> to vector<32x32xf32>
    %cst_7 = arith.constant dense<0.000000e+00> : vector<8x32xf32>
    %17 = tpu.matmul %8, %16, %cst_7 {dimension_numbers = #tpu.dot_dimension_numbers<[1], [0], [0], [1], [0, 0, 1, 1], [], []>} : vector<8x32xf32>, vector<32x32xf32>, vector<8x32xf32> -> vector<8x32xf32>
    %18 = arith.addf %15, %17 : vector<8x32xf32>
    %c0_8 = arith.constant 0 : index
    %c0_9 = arith.constant 0 : index
    %c0_10 = arith.constant 0 : index
    %19 = vector.load %arg6[%c0_8, %c0_9, %c0_10] : memref<1x1x32xf32, #tpu.memory_space<vmem>>, vector<1x1x32xf32>
    %20 = vector.shape_cast %19 : vector<1x1x32xf32> to vector<1x32xf32>
    %21 = vector.broadcast %20 : vector<1x32xf32> to vector<8x32xf32>
    %22 = arith.addf %18, %21 : vector<8x32xf32>
    %23 = arith.addf %22, %3 : vector<8x32xf32>
    %cst_11 = arith.constant dense<0.000000e+00> : vector<8xf32>
    %24 = vector.multi_reduction <add>, %23, %cst_11 [1] : vector<8x32xf32> to vector<8xf32>
    %25 = vector.shape_cast %24 : vector<8xf32> to vector<8x1xf32>
    %cst_12 = arith.constant 3.200000e+01 : f32
    %26 = vector.broadcast %cst_12 : f32 to vector<8x1xf32>
    %27 = arith.divf %25, %26 : vector<8x1xf32>
    %28 = vector.broadcast %27 : vector<8x1xf32> to vector<8x32xf32>
    %29 = arith.subf %23, %28 : vector<8x32xf32>
    %30 = arith.mulf %29, %29 : vector<8x32xf32>
    %cst_13 = arith.constant dense<0.000000e+00> : vector<8xf32>
    %31 = vector.multi_reduction <add>, %30, %cst_13 [1] : vector<8x32xf32> to vector<8xf32>
    %32 = vector.shape_cast %31 : vector<8xf32> to vector<8x1xf32>
    %cst_14 = arith.constant 3.200000e+01 : f32
    %33 = vector.broadcast %cst_14 : f32 to vector<8x1xf32>
    %34 = arith.divf %32, %33 : vector<8x1xf32>
    %cst_15 = arith.constant 9.99999974E-6 : f32
    %35 = vector.broadcast %cst_15 : f32 to vector<8x1xf32>
    %36 = arith.addf %34, %35 : vector<8x1xf32>
    %37 = math.rsqrt %36 : vector<8x1xf32>
    %38 = vector.broadcast %37 : vector<8x1xf32> to vector<8x32xf32>
    %39 = arith.mulf %29, %38 : vector<8x32xf32>
    %c0_16 = arith.constant 0 : index
    %c0_17 = arith.constant 0 : index
    %c0_18 = arith.constant 0 : index
    %40 = vector.load %arg7[%c0_16, %c0_17, %c0_18] : memref<1x1x32xf32, #tpu.memory_space<vmem>>, vector<1x1x32xf32>
    %41 = vector.shape_cast %40 : vector<1x1x32xf32> to vector<1x32xf32>
    %42 = vector.broadcast %41 : vector<1x32xf32> to vector<8x32xf32>
    %43 = arith.mulf %39, %42 : vector<8x32xf32>
    %c0_19 = arith.constant 0 : index
    %c0_20 = arith.constant 0 : index
    %c0_21 = arith.constant 0 : index
    %44 = vector.load %arg8[%c0_19, %c0_20, %c0_21] : memref<1x1x32xf32, #tpu.memory_space<vmem>>, vector<1x1x32xf32>
    %45 = vector.shape_cast %44 : vector<1x1x32xf32> to vector<1x32xf32>
    %46 = vector.broadcast %45 : vector<1x32xf32> to vector<8x32xf32>
    %47 = arith.addf %43, %46 : vector<8x32xf32>
    %48 = arith.negf %47 : vector<8x32xf32>
    %49 = math.exp %48 : vector<8x32xf32>
    %cst_22 = arith.constant 1.000000e+00 : f32
    %50 = vector.broadcast %cst_22 : f32 to vector<8x32xf32>
    %51 = arith.addf %50, %49 : vector<8x32xf32>
    %52 = arith.divf %50, %51 : vector<8x32xf32>
    %53 = arith.mulf %47, %52 : vector<8x32xf32>
    %c0_23 = arith.constant 0 : index
    %c0_24 = arith.constant 0 : index
    %c0_25 = arith.constant 0 : index
    %54 = vector.load %arg9[%c0_23, %c0_24, %c0_25] : memref<1x32x32xf32, #tpu.memory_space<vmem>>, vector<1x32x32xf32>
    %55 = vector.shape_cast %54 : vector<1x32x32xf32> to vector<32x32xf32>
    %cst_26 = arith.constant dense<0.000000e+00> : vector<8x32xf32>
    %56 = tpu.matmul %53, %55, %cst_26 {dimension_numbers = #tpu.dot_dimension_numbers<[1], [0], [0], [1], [0, 0, 1, 1], [], []>} : vector<8x32xf32>, vector<32x32xf32>, vector<8x32xf32> -> vector<8x32xf32>
    %c0_27 = arith.constant 0 : index
    %c0_28 = arith.constant 0 : index
    %c0_29 = arith.constant 0 : index
    %57 = vector.load %arg10[%c0_27, %c0_28, %c0_29] : memref<1x1x32xf32, #tpu.memory_space<vmem>>, vector<1x1x32xf32>
    %58 = vector.shape_cast %57 : vector<1x1x32xf32> to vector<1x32xf32>
    %59 = vector.broadcast %58 : vector<1x32xf32> to vector<8x32xf32>
    %60 = arith.addf %56, %59 : vector<8x32xf32>
    %61 = arith.negf %60 : vector<8x32xf32>
    %62 = math.exp %61 : vector<8x32xf32>
    %cst_30 = arith.constant 1.000000e+00 : f32
    %63 = vector.broadcast %cst_30 : f32 to vector<8x32xf32>
    %64 = arith.addf %63, %62 : vector<8x32xf32>
    %65 = arith.divf %63, %64 : vector<8x32xf32>
    %66 = arith.mulf %60, %65 : vector<8x32xf32>
    %c0_31 = arith.constant 0 : index
    %c0_32 = arith.constant 0 : index
    %c0_33 = arith.constant 0 : index
    %67 = vector.load %arg11[%c0_31, %c0_32, %c0_33] : memref<1x32x32xf32, #tpu.memory_space<vmem>>, vector<1x32x32xf32>
    %68 = vector.shape_cast %67 : vector<1x32x32xf32> to vector<32x32xf32>
    %cst_34 = arith.constant dense<0.000000e+00> : vector<8x32xf32>
    %69 = tpu.matmul %66, %68, %cst_34 {dimension_numbers = #tpu.dot_dimension_numbers<[1], [0], [0], [1], [0, 0, 1, 1], [], []>} : vector<8x32xf32>, vector<32x32xf32>, vector<8x32xf32> -> vector<8x32xf32>
    %c0_35 = arith.constant 0 : index
    %c0_36 = arith.constant 0 : index
    %c0_37 = arith.constant 0 : index
    %70 = vector.load %arg12[%c0_35, %c0_36, %c0_37] : memref<1x1x32xf32, #tpu.memory_space<vmem>>, vector<1x1x32xf32>
    %71 = vector.shape_cast %70 : vector<1x1x32xf32> to vector<1x32xf32>
    %72 = vector.broadcast %71 : vector<1x32xf32> to vector<8x32xf32>
    %73 = arith.addf %69, %72 : vector<8x32xf32>
    %c0_38 = arith.constant 0 : index
    %c0_39 = arith.constant 0 : index
    %c0_40 = arith.constant 0 : index
    %74 = vector.load %arg13[%c0_38, %c0_39, %c0_40] : memref<1x32x32xf32, #tpu.memory_space<vmem>>, vector<1x32x32xf32>
    %75 = vector.shape_cast %74 : vector<1x32x32xf32> to vector<32x32xf32>
    %cst_41 = arith.constant dense<0.000000e+00> : vector<8x32xf32>
    %76 = tpu.matmul %73, %75, %cst_41 {dimension_numbers = #tpu.dot_dimension_numbers<[1], [0], [0], [1], [0, 0, 1, 1], [], []>} : vector<8x32xf32>, vector<32x32xf32>, vector<8x32xf32> -> vector<8x32xf32>
    %c0_42 = arith.constant 0 : index
    %c0_43 = arith.constant 0 : index
    %c0_44 = arith.constant 0 : index
    %77 = vector.load %arg14[%c0_42, %c0_43, %c0_44] : memref<1x1x32xf32, #tpu.memory_space<vmem>>, vector<1x1x32xf32>
    %78 = vector.shape_cast %77 : vector<1x1x32xf32> to vector<1x32xf32>
    %79 = vector.broadcast %78 : vector<1x32xf32> to vector<8x32xf32>
    %80 = arith.addf %76, %79 : vector<8x32xf32>
    %c0_45 = arith.constant 0 : index
    %c0_46 = arith.constant 0 : index
    %81 = vector.load %arg18[%c0_45, %c0_46] : memref<8x32xf32, #tpu.memory_space<vmem>>, vector<8x32xf32>
    tpu.vector_store %arg18[%c0_45, %c0_46], %80 {strides = array<i32>} : memref<8x32xf32, #tpu.memory_space<vmem>>, vector<8x32xf32>,
    %c1_i32 = arith.constant 1 : i32
    %82 = arith.cmpi eq, %arg1, %c1_i32 : i32
    %83 = arith.extui %82 : i1 to i32
    %c0_i32_47 = arith.constant 0 : i32
    %84 = arith.cmpi ne, %83, %c0_i32_47 : i32
    scf.if %84 {
      %85 = vector.extract_strided_slice %80 {offsets = [7, 0], sizes = [1, 32], strides = [1, 1]} : vector<8x32xf32> to vector<1x32xf32>
      %c0_48 = arith.constant 0 : index
      %c0_49 = arith.constant 0 : index
      %86 = vector.load %arg15[%c0_48, %c0_49] : memref<32x1xf32, #tpu.memory_space<vmem>>, vector<32x1xf32>
      %cst_50 = arith.constant dense<0.000000e+00> : vector<1x1xf32>
      %87 = tpu.matmul %85, %86, %cst_50 {dimension_numbers = #tpu.dot_dimension_numbers<[1], [0], [0], [1], [0, 0, 1, 1], [], []>} : vector<1x32xf32>, vector<32x1xf32>, vector<1x1xf32> -> vector<1x1xf32>
      %c0_51 = arith.constant 0 : index
      %c0_52 = arith.constant 0 : index
      %88 = vector.load %arg16[%c0_51, %c0_52] : memref<1x1xf32, #tpu.memory_space<vmem>>, vector<1x1xf32>
      %89 = arith.addf %87, %88 : vector<1x1xf32>
      %c0_53 = arith.constant 0 : index
      %c0_54 = arith.constant 0 : index
      %c0_55 = arith.constant 0 : index
      %90 = vector.load %arg17[%c0_53, %c0_54, %c0_55] : memref<1x1x1xf32, #tpu.memory_space<vmem>>, vector<1x1x1xf32>
      %91 = vector.shape_cast %90 : vector<1x1x1xf32> to vector<1x1xf32>
      %92 = vector.shape_cast %89 : vector<1x1xf32> to vector<1x1x1xf32>
      tpu.vector_store %arg17[%c0_53, %c0_54, %c0_55], %92 {strides = array<i32>} : memref<1x1x1xf32, #tpu.memory_space<vmem>>, vector<1x1x1xf32>,
    } else {
    }
    return
  }
  func.func @transform_0(%arg0: i32, %arg1: i32) -> (i32, i32, i32) {
    %c0_i32 = arith.constant 0 : i32
    %c0_i32_0 = arith.constant 0 : i32
    %c0_i32_1 = arith.constant 0 : i32
    return %arg0, %c0_i32, %c0_i32_0 : i32, i32, i32
  }
  func.func @transform_1(%arg0: i32, %arg1: i32) -> (i32, i32) {
    %c0_i32 = arith.constant 0 : i32
    %c0_i32_0 = arith.constant 0 : i32
    %c0_i32_1 = arith.constant 0 : i32
    return %c0_i32, %c0_i32_0 : i32, i32
  }
  func.func @transform_2(%arg0: i32, %arg1: i32) -> (i32, i32) {
    %c0_i32 = arith.constant 0 : i32
    %c0_i32_0 = arith.constant 0 : i32
    %c0_i32_1 = arith.constant 0 : i32
    return %c0_i32, %c0_i32_0 : i32, i32
  }
  func.func @transform_3(%arg0: i32, %arg1: i32) -> (i32, i32, i32) {
    %c0_i32 = arith.constant 0 : i32
    %c0_i32_0 = arith.constant 0 : i32
    %c0_i32_1 = arith.constant 0 : i32
    return %arg1, %c0_i32, %c0_i32_0 : i32, i32, i32
  }
  func.func @transform_4(%arg0: i32, %arg1: i32) -> (i32, i32, i32) {
    %c0_i32 = arith.constant 0 : i32
    %c0_i32_0 = arith.constant 0 : i32
    %c0_i32_1 = arith.constant 0 : i32
    return %arg1, %c0_i32, %c0_i32_0 : i32, i32, i32
  }
  func.func @transform_5(%arg0: i32, %arg1: i32) -> (i32, i32, i32) {
    %c0_i32 = arith.constant 0 : i32
    %c0_i32_0 = arith.constant 0 : i32
    %c0_i32_1 = arith.constant 0 : i32
    return %arg1, %c0_i32, %c0_i32_0 : i32, i32, i32
  }
  func.func @transform_6(%arg0: i32, %arg1: i32) -> (i32, i32, i32) {
    %c0_i32 = arith.constant 0 : i32
    %c0_i32_0 = arith.constant 0 : i32
    %c0_i32_1 = arith.constant 0 : i32
    return %arg1, %c0_i32, %c0_i32_0 : i32, i32, i32
  }
  func.func @transform_7(%arg0: i32, %arg1: i32) -> (i32, i32, i32) {
    %c0_i32 = arith.constant 0 : i32
    %c0_i32_0 = arith.constant 0 : i32
    %c0_i32_1 = arith.constant 0 : i32
    return %arg1, %c0_i32, %c0_i32_0 : i32, i32, i32
  }
  func.func @transform_8(%arg0: i32, %arg1: i32) -> (i32, i32, i32) {
    %c0_i32 = arith.constant 0 : i32
    %c0_i32_0 = arith.constant 0 : i32
    %c0_i32_1 = arith.constant 0 : i32
    return %arg1, %c0_i32, %c0_i32_0 : i32, i32, i32
  }
  func.func @transform_9(%arg0: i32, %arg1: i32) -> (i32, i32, i32) {
    %c0_i32 = arith.constant 0 : i32
    %c0_i32_0 = arith.constant 0 : i32
    %c0_i32_1 = arith.constant 0 : i32
    return %arg1, %c0_i32, %c0_i32_0 : i32, i32, i32
  }
  func.func @transform_10(%arg0: i32, %arg1: i32) -> (i32, i32, i32) {
    %c0_i32 = arith.constant 0 : i32
    %c0_i32_0 = arith.constant 0 : i32
    %c0_i32_1 = arith.constant 0 : i32
    return %arg1, %c0_i32, %c0_i32_0 : i32, i32, i32
  }
  func.func @transform_11(%arg0: i32, %arg1: i32) -> (i32, i32, i32) {
    %c0_i32 = arith.constant 0 : i32
    %c0_i32_0 = arith.constant 0 : i32
    %c0_i32_1 = arith.constant 0 : i32
    return %arg1, %c0_i32, %c0_i32_0 : i32, i32, i32
  }
  func.func @transform_12(%arg0: i32, %arg1: i32) -> (i32, i32, i32) {
    %c0_i32 = arith.constant 0 : i32
    %c0_i32_0 = arith.constant 0 : i32
    %c0_i32_1 = arith.constant 0 : i32
    return %arg1, %c0_i32, %c0_i32_0 : i32, i32, i32
  }
  func.func @transform_13(%arg0: i32, %arg1: i32) -> (i32, i32) {
    %c0_i32 = arith.constant 0 : i32
    %c0_i32_0 = arith.constant 0 : i32
    %c0_i32_1 = arith.constant 0 : i32
    return %c0_i32, %c0_i32_0 : i32, i32
  }
  func.func @transform_14(%arg0: i32, %arg1: i32) -> (i32, i32) {
    %c0_i32 = arith.constant 0 : i32
    %c0_i32_0 = arith.constant 0 : i32
    %c0_i32_1 = arith.constant 0 : i32
    return %c0_i32, %c0_i32_0 : i32, i32
  }
  func.func @transform_15(%arg0: i32, %arg1: i32) -> (i32, i32, i32) {
    %c0_i32 = arith.constant 0 : i32
    %c0_i32_0 = arith.constant 0 : i32
    %c0_i32_1 = arith.constant 0 : i32
    return %arg0, %c0_i32, %c0_i32_0 : i32, i32, i32
  }
}

</mosaic_0001>

<bundles_post_ra>
// kernel: mamba_model_forward.1
= control target key start
LH: loop header
LB: loop body
LE: loop exit
PB: predicated region body
PF: predicated region fallthrough
CT: control target
= control target key end

     0   :  { %s1945_s20 = smov 0   ;;  %s1947_s21 = smov 0   ;;  %s2168_s0 = inlined_call_operand.vmem [shape: f32[2,8,16], index: 0, kind: input, shape index: {}]   ;;  %s2169_s1 = inlined_call_operand.vmem [shape: f32[16,32], index: 1, kind: input, shape index: {}]   ;;  %s2170_s2 = inlined_call_operand.vmem [shape: f32[1,32], index: 2, kind: input, shape index: {}]   ;;  %s2171_s3 = inlined_call_operand.vmem [shape: f32[2,96,32], index: 3, kind: input, shape index: {}]   ;;  %s2172_s4 = inlined_call_operand.vmem [shape: f32[2,1,32], index: 4, kind: input, shape index: {}]   ;;  %s2173_s5 = inlined_call_operand.vmem [shape: f32[2,1,32], index: 5, kind: input, shape index: {}]   ;;  %s2174_s6 = inlined_call_operand.vmem [shape: f32[2,1,32], index: 6, kind: input, shape index: {}]   ;;  %s2175_s7 = inlined_call_operand.vmem [shape: f32[2,32,32], index: 7, kind: input, shape index: {}]   ;;  %s2176_s8 = inlined_call_operand.vmem [shape: f32[2,1,32], index: 8, kind: input, shape index: {}]   ;;  %s2177_s9 = inlined_call_operand.vmem [shape: f32[2,32,32], index: 9, kind: input, shape index: {}]   ;;  %s2178_s10 = inlined_call_operand.vmem [shape: f32[2,1,32], index: 10, kind: input, shape index: {}]   ;;  %s2179_s11 = inlined_call_operand.vmem [shape: f32[2,32,32], index: 11, kind: input, shape index: {}]   ;;  %s2180_s12 = inlined_call_operand.vmem [shape: f32[2,1,32], index: 12, kind: input, shape index: {}]   ;;  %s2181_s13 = inlined_call_operand.vmem [shape: f32[32,1], index: 13, kind: input, shape index: {}]   ;;  %s2182_s14 = inlined_call_operand.<no memory space> [shape: f32[1,1], index: 14, kind: input, shape index: {}]   ;;  %s2183_s15 = inlined_call_operand.vmem [shape: f32[2,1,1], index: 15, kind: output, shape index: {}]  }
   0x1   :  { %2190 = sst [smem:[#allocation10_spill]] %s2168_s0  ;;  %v20_v0 = vstv %s2182_s14  ;;  %s1949_s22 = smov 0  }
   0x2   :  { %2191 = sst [smem:[#allocation11_spill]] %s2169_s1  ;;  %21 = vst [vmem:[#allocation3] sm:$0x1] %v20_v0  ;;  %s1951_s23 = smov 0  }
   0x3   :  { %2192 = sst [smem:[#allocation12_spill]] %s2170_s2  ;;  %s1953_s24 = smov 0  }
   0x4   :  { %2193 = sst [smem:[#allocation13_spill]] %s2171_s3 }
   0x5   :  { %2194 = sst [smem:[#allocation14_spill]] %s2175_s7 }
   0x6   :  { %2195 = sst [smem:[#allocation15_spill]] %s2177_s9 }
   0x7   :  { %2196 = sst [smem:[#allocation16_spill]] %s2181_s13 }
   0x8 LB: > { %2197 = sst [smem:[#allocation4_spill]] %s1835_s20  ;;  %s36_s14 = sadd.s32 1, %s1843_s22  ;;  %s1851_s24 = sphi %s1953_s24, %s27_s24   ;;  %s1847_s23 = sphi %s1951_s23, %s2222_s23   ;;  %s1843_s22 = sphi %s1949_s22, %s2221_s22   ;;  %s1839_s21 = sphi %s1947_s21, %s2220_s21   ;;  %s1835_s20 = sphi %s1945_s20, %s2219_s20  }
   0x9   : > { %2198 = sst [smem:[#allocation5_spill]] %s1843_s22  ;;  %s39_s25 = sadd.s32 1, %s1847_s23 }
   0xa   : > { %2199 = sst [smem:[#allocation6_spill]] %s1847_s23  ;;  %p37_p0 = scmp.ge.s32.totalorder %s36_s14, 2 }
   0xb   : > { %2200 = sst [smem:[#allocation7_spill]] %s1851_s24  ;;  %p1553_p1 = scmp.ge.s32.totalorder %s1851_s24, 1 }
   0xc   : > { %p538_p2 = scmp.lt.s32.totalorder %s1851_s24, 5  ;;  %s2224_s14 = smov (%p37_p0, %s36_s14), 0 }
   0xd   : > { %2201 = sst [smem:[#allocation8_spill]] %s2224_s14  ;;  %s2226_s25 = smov (!%p37_p0, %s39_s25), %s1847_s23 }
   0xe   : > { %p539_p3 = pnand %p1553_p1, %p538_p2  ;;  %p41_p4 = scmp.ge.s32.totalorder %s2226_s25, 2 }
   0xf   : > { %p621_p5 = scmp.lt.s32.totalorder (!%p539_p3), %s1839_s21, 1  ;;  %p625_p6 = scmp.lt.s32.totalorder (!%p539_p3), %s1835_s20, 1 }
  0x10   : > { %s2228_s25 = smov (%p41_p4, %s2226_s25), 0  ;;  %542 = sbr.rel (%p539_p3) target bundleno = 1723 (0x6bb), region = 80 }
  0x11   : > { %2202 = sst [smem:[#allocation9_spill]] %s2228_s25  ;;  %s2203_s0 = sld [smem:[#allocation10_spill]] (!%p539_p3) }
  0x12   : > { %s2204_s3 = sld [smem:[#allocation13_spill]] (!%p539_p3)  ;;  %s2205_s7 = sld [smem:[#allocation14_spill]] (!%p539_p3) }
  0x13   : > { %s2206_s9 = sld [smem:[#allocation15_spill]] (!%p539_p3)  ;;  %s2207_s25 = sld [smem:[#allocation4_spill]] (!%p539_p3) }
  0x17   : > { %s2230_s21 = smov (!%p621_p5, %s1839_s21), 1 }
  0x18   : > { %s1981_s26 = scalar_select %p625_p6, %s1835_s20, 1 }
  0x19   : > { %s1554_s27 = sshll.u32 %s2230_s21, 3  ;;  %p1562_p7 = scmp.ne.s32.totalorder %s2207_s25, 0 }
  0x1a   : > { %s624_s18 = scalar_lea.vmem %s2203_s0, %s1554_s27  ;;  %s1753_s19 = smul.u32 96, %s1981_s26  ;;  %v1853_v3 = vmov (!%p1562_p7), 0.0|0.0   ;;  %vm1854_vm0 = vmmov (!%p1562_p7), 0   ;;  %v1855_v5 = vmov (!%p1562_p7), 0.0   ;;  %vm680_vm1 = vcmask (!%p1562_p7), 130048  }
  0x1b   : > { %s1583_s16 = sshll.u32 %s1981_s26, 5  ;;  %s654_s28 = scalar_lea.vmem %s2178_s10, %s1981_s26  ;;  %1708 = vmatprep.subr.bf16.mxu0 (!%p1562_p7), %v1853_v3  ;;  %1628 = vmatprep.mubr.msk.f32.mxu0 (!%p1562_p7), %vm1854_vm0, %v1855_v5  ;;  %v670_v6 = vld [vmem:[%s624_s18] sm:$0xff] (!%p1562_p7)  ;;  %vm754_vm2 = vcmask (!%p1562_p7), 261120  }
  0x1c   : > { %s2003_s20 = scalar_lea.vmem %s2204_s3, %s1753_s19  ;;  %s2017_s23 = scalar_lea.vmem %s2205_s7, %s1583_s16 }
  0x1d   : > { %s2022_s1 = scalar_lea.vmem %s2206_s9, %s1583_s16  ;;  %s2031_s13 = scalar_lea.vmem %s2179_s11, %s1583_s16 }
  0x1e   : > { %s662_s14 = scalar_lea.vmem %s2180_s12, %s1981_s26  ;;  %669 = sbr.rel (%p1562_p7) target bundleno = 259 (0x103), region = 84 }
  0x1f   : > { %s2208_s24 = sld [smem:[#allocation11_spill]] (!%p1562_p7)  ;;  %s2210_s2 = sld [smem:[#allocation12_spill]] (!%p1562_p7) }
  0x25   : > { %s2209_s3 = smov %s2208_s24  ;;  %v671_v1 = vld [vmem:[%s2208_s24] sm:$0xff] }
  0x26   : > { %v672_v2 = vld [vmem:[%s2209_s3 + $0x8] sm:$0xff]  ;;  %v1563_v7 = vld [vmem:[%s2210_s2] ss:$0 sm:$0xff] }
  0x27   : > { %v1709_v4 = vpack.c.bf16 %v672_v2, %v671_v1 }
  0x29   : > { %1710 = vmatpush3.bf16.msra.mxu0 %v1709_v4 }
  0x2c   : > { %1629 = vmatmul.mubr.msk.f32.vlgmr.msra.gmra.mrb[0].mxu0 %vm680_vm1, %v670_v6 }
  0xff   : > { %v750_v8 = vpop.f32.mrb[0].mxu0 }
 0x100   : > { %v751_v9 = vadd.f32 %v1563_v7, %v750_v8  ;;  %v1630_v10 = vpop.f32.mrb[1].mxu0 }
 0x102   : > { %755 = vst.msk [vmem:[#allocation2] sm:$0xff] %vm754_vm2, %v751_v9 }
 0x103 PF: > { %v770_v11 = vld [vmem:[%s2003_s20 + $0x20] sm:$0xff]  ;;  %v771_v12 = vld [vmem:[%s2003_s20 + $0x28] sm:$0xff]  ;;  %v1856_v14 = vmov 0.0|0.0   ;;  %v772_v17 = vld [vmem:[%s2003_s20 + $0x30] sm:$0xff]  ;;  %vm1857_vm3 = vmmov 0   ;;  %v1858_v22 = vmov 0.0   ;;  %s2211_s9 = scalar_lea.vmem %s2172_s4, %s1981_s26  ;;  %s2212_s19 = scalar_lea.vmem %s2173_s5, %s1981_s26 }
 0x104   : > { %v766_v13 = vld [vmem:[%s2003_s20] sm:$0xff]  ;;  %1711 = vmatprep.subr.bf16.mxu0 %v1856_v14  ;;  %v1712_v15 = vpack.c.bf16 %v771_v12, %v770_v11  ;;  %1717 = vmatprep.subr.bf16.mxu1 %v1856_v14  ;;  %v767_v16 = vld [vmem:[%s2003_s20 + $0x8] sm:$0xff]  ;;  %v773_v18 = vld [vmem:[%s2003_s20 + $0x38] sm:$0xff]  ;;  %vm760_vm4 = vcmask 1040384   ;;  %vm778_vm5 = vcmask 261120   ;;  %vm764_vm6 = vcmask 1046528   ;;  %s2213_s27 = scalar_lea.vmem %s2174_s6, %s1981_s26  ;;  %s2214_s22 = scalar_lea.vmem %s2176_s8, %s1981_s26 }
 0x105   : > { %v1718_v19 = vpack.c.bf16 %v767_v16, %v766_v13  ;;  %v768_v20 = vld [vmem:[%s2003_s20 + $0x10] sm:$0xff]  ;;  %v769_v21 = vld [vmem:[%s2003_s20 + $0x18] sm:$0xff]  ;;  %1639 = vmatprep.mubr.msk.f32.mxu0 %vm1857_vm3, %v1858_v22  ;;  %1650 = vmatprep.mubr.msk.f32.mxu1 %vm1857_vm3, %v1858_v22  ;;  %v1715_v24 = vpack.c.bf16 %v773_v18, %v772_v17  ;;  %v774_v27 = vld [vmem:[%s2003_s20 + $0x40] sm:$0xff] }
 0x106   : > { %1713 = vmatpush3.bf16.msra.mxu0 %v1712_v15  ;;  %v1721_v25 = vpack.c.bf16 %v769_v21, %v768_v20  ;;  %v775_v28 = vld [vmem:[%s2003_s20 + $0x48] sm:$0xff]  ;;  %v776_v31 = vld [vmem:[%s2003_s20 + $0x50] sm:$0xff]  ;;  %v777_v32 = vld [vmem:[%s2003_s20 + $0x58] sm:$0xff] }
 0x107   : > { %1719 = vmatpush3.bf16.msra.mxu1 %v1718_v19  ;;  %1714 = vmatprep.subr.bf16.mxu0 %v1856_v14  ;;  %v1724_v29 = vpack.c.bf16 %v775_v28, %v774_v27  ;;  %v1727_v33 = vpack.c.bf16 %v777_v32, %v776_v31  ;;  %v1568_v42 = vld [vmem:[%s2211_s9] ss:$0 sm:$0xff]  ;;  %v1045_v54 = vld [vmem:[%s2017_s23 + $0x8] sm:$0xff]  ;;  %v1046_v55 = vld [vmem:[%s2017_s23 + $0x10] sm:$0xff] }
 0x108   : > { %1720 = vmatprep.subr.bf16.mxu1 %v1856_v14  ;;  %v1044_v53 = vld [vmem:[%s2017_s23] sm:$0xff]  ;;  %v1047_v57 = vld [vmem:[%s2017_s23 + $0x18] sm:$0xff]  ;;  %v1136_v10 = vld [vmem:[%s2022_s1 + $0x8] sm:$0xff] }
 0x109   : > { %v756_v23 = vld [vmem:[#allocation2] sm:$0xff]  ;;  %v1730_v56 = vpack.c.bf16 %v1045_v54, %v1044_v53  ;;  %v1733_v58 = vpack.c.bf16 %v1047_v57, %v1046_v55  ;;  %v1137_v12 = vld [vmem:[%s2022_s1 + $0x10] sm:$0xff]  ;;  %v1138_v13 = vld [vmem:[%s2022_s1 + $0x18] sm:$0xff] }
 0x10a   : > { %v758_v26 = vrot.slane %v756_v23, 7  ;;  %1716 = vmatpush3.bf16.msra.mxu0 %v1715_v24  ;;  %v762_v34 = vrot.slane %v756_v23, 1  ;;  %v1569_v63 = vld [vmem:[%s2212_s19] ss:$0 sm:$0xff]  ;;  %v1739_v15 = vpack.c.bf16 %v1138_v13, %v1137_v12  ;;  %v1220_v17 = vld [vmem:[%s2031_s13 + $0x8] sm:$0xff]  ;;  %v1222_v28 = vld [vmem:[%s2031_s13 + $0x18] sm:$0xff] }
 0x10b   : > { %1722 = vmatpush3.bf16.msra.mxu1 %v1721_v25  ;;  %1723 = vmatprep.subr.bf16.mxu0 %v1856_v14  ;;  %v1570_v1 = vld [vmem:[%s2213_s27] ss:$0 sm:$0xff] }
 0x10c   : > { %v761_v30 = vsel %vm760_vm4, 0.0, %v758_v26  ;;  %1729 = vmatprep.subr.bf16.mxu1 %v1856_v14  ;;  %v765_v35 = vsel %vm764_vm6, %v762_v34, 0.0  ;;  %v1135_v9 = vld [vmem:[%s2022_s1] sm:$0xff] }
 0x10d   : > { %1640 = vmatmul.mubr.msk.f32.vlgmr.msra.gmra.mrb[0].mxu0 %vm778_vm5, %v756_v23  ;;  %v1736_v11 = vpack.c.bf16 %v1136_v10, %v1135_v9  ;;  %v1219_v16 = vld [vmem:[%s2031_s13] sm:$0xff] }
 0x10e   : > { %1651 = vmatmul.mubr.msk.f32.vlgmr.msra.gmra.mrb[0].mxu1 %vm778_vm5, %v761_v30  ;;  %1725 = vmatpush3.bf16.msra.mxu0 %v1724_v29  ;;  %v1742_v18 = vpack.c.bf16 %v1220_v17, %v1219_v16  ;;  %v1572_v19 = vld [vmem:[%s2214_s22] ss:$0 sm:$0xff] }
 0x10f   : > { %1726 = vmatprep.subr.bf16.mxu0 %v1856_v14  ;;  %1661 = vmatprep.mubr.msk.f32.mxu0 %vm1857_vm3, %v1858_v22  ;;  %v1575_v30 = vld [vmem:[%s654_s28] ss:$0 sm:$0xff] }
 0x110   : > { %1672 = vmatprep.mubr.msk.f32.mxu1 %vm1857_vm3, %v1858_v22  ;;  %1731 = vmatpush3.bf16.msra.mxu1 %v1730_v56  ;;  %v1577_v34 = vld [vmem:[%s662_s14] ss:$0 sm:$0xff] }
 0x111   : > { %1732 = vmatprep.subr.bf16.mxu1 %v1856_v14 }
 0x112   : > { %1728 = vmatpush3.bf16.msra.mxu0 %v1727_v33 }
 0x113   : > { %1735 = vmatprep.subr.bf16.mxu0 %v1856_v14 }
 0x114   : > { %1734 = vmatpush3.bf16.msra.mxu1 %v1733_v58 }
 0x115   : > { %1662 = vmatmul.mubr.msk.f32.vlgmr.msra.gmra.mrb[2].mxu0 %vm778_vm5, %v765_v35  ;;  %1741 = vmatprep.subr.bf16.mxu1 %v1856_v14 }
 0x116   : > { %1683 = vmatprep.mubr.msk.f32.mxu0 %vm1857_vm3, %v1858_v22  ;;  %1737 = vmatpush3.bf16.msra.mxu0 %v1736_v11 }
 0x117   : > { %1738 = vmatprep.subr.bf16.mxu0 %v1856_v14 }
 0x11a   : > { %1740 = vmatpush3.bf16.msra.mxu0 %v1739_v15 }
 0x1e0   : > { %v847_v36 = vpop.f32.mrb[0].mxu0 }
 0x1e1   : > { %v1641_v37 = vpop.f32.mrb[1].mxu0  ;;  %v920_v38 = vpop.f32.mrb[0].mxu1 }
 0x1e2   : > { %v921_v39 = vadd.f32 %v920_v38, %v847_v36  ;;  %v1652_v40 = vpop.f32.mrb[1].mxu1 }
 0x1e8   : > { %v993_v41 = vpop.f32.mrb[2].mxu0 }
 0x1e9   : > { %v997_v43 = vadd.f32 %v993_v41, %v921_v39  ;;  %v1663_v44 = vpop.f32.mrb[3].mxu0 }
 0x1eb   : > { %v1005_v45 = vadd.f32 %v1568_v42, %v997_v43 }
 0x1ed   : > { %v1006_v46 = vadd.f32 %v1005_v45, %v756_v23 }
 0x1ef   : > { %v1007_v47 = vsel %vm778_vm5, %v1006_v46, 0.0 }
 0x1f0   : > { %1008 = vadd.xlane.f32.xlu0 %v1007_v47 }
 0x27d   : > { %v1009_v48 = vpop.xlane.xlu0 %1008 }
 0x27e   : > { %v1011_v49 = vmul.f32 0.03125, %v1009_v48 }
 0x280   : > { %v1012_v50 = vsub.f32 %v1006_v46, %v1011_v49 }
 0x282   : > { %v1013_v51 = vmul.f32 %v1012_v50, %v1012_v50 }
 0x284   : > { %v1014_v52 = vsel %vm778_vm5, %v1013_v51, 0.0 }
 0x285   : > { %1015 = vadd.xlane.f32.xlu0 %v1014_v52 }
 0x312   : > { %v1016_v59 = vpop.xlane.xlu0 %1015 }
 0x313   : > { %v1017_v60 = vmul.f32 0.03125, %v1016_v59 }
 0x315   : > { %v1018_v61 = vadd.f32 1e-05, %v1017_v60 }
 0x317   : > { %1803 = vrsqrt.f32 %v1018_v61 }
 0x321   : > { %v1804_v62 = vpop.eup %1803 }
 0x322   : > { %v1020_v0 = vmul.f32 %v1804_v62, %v1012_v50 }
 0x324   : > { %v1028_v2 = vmul.f32 %v1569_v63, %v1020_v0 }
 0x326   : > { %v1036_v3 = vadd.f32 %v1570_v1, %v1028_v2 }
 0x328   : > { %v1571_v4 = vmul.f32 -1.442695, %v1036_v3 }
 0x32a   : > { %1805 = vpow2.f32 %v1571_v4 }
 0x334   : > { %v1806_v5 = vpop.eup %1805 }
 0x335   : > { %v1040_v6 = vadd.f32 1.0, %v1806_v5 }
 0x337   : > { %1807 = vrcp.f32 %v1040_v6 }
 0x341   : > { %v1808_v7 = vpop.eup %1807 }
 0x342   : > { %v1043_v8 = vmul.f32 %v1808_v7, %v1036_v3 }
 0x344   : > { %1673 = vmatmul.mubr.msk.f32.vlgmr.msra.gmra.mrb[2].mxu1 %vm778_vm5, %v1043_v8 }
 0x345   : > { %1694 = vmatprep.mubr.msk.f32.mxu1 %vm1857_vm3, %v1858_v22  ;;  %1743 = vmatpush3.bf16.msra.mxu1 %v1742_v18 }
 0x346   : > { %1744 = vmatprep.subr.bf16.mxu1 %v1856_v14  ;;  %v1221_v14 = vld [vmem:[%s2031_s13 + $0x10] sm:$0xff]  ;;  %s2215_s13 = sld [smem:[#allocation4_spill]] }
 0x347   : > { %v1745_v29 = vpack.c.bf16 %v1222_v28, %v1221_v14 }
 0x349   : > { %1746 = vmatpush3.bf16.msra.mxu1 %v1745_v29 }
 0x34c   : > { %p1579_p8 = scmp.ne.s32.totalorder %s2215_s13, 1 }
 0x34d   : > { %s2216_s0 = sld [smem:[#allocation16_spill]] (!%p1579_p8)  ;;  %v1859_v41 = vmov (!%p1579_p8), 0.0|0.0   ;;  %vm1860_vm7 = vmmov (!%p1579_p8), 0   ;;  %v1861_v44 = vmov (!%p1579_p8), 0.0   ;;  %v1312_v47 = vld [vmem:[#allocation3] sm:$0x1] (!%p1579_p8)  ;;  %s2217_s29 = scalar_lea.vmem (!%p1579_p8), %s2183_s15, %s2230_s21 }
 0x34e   : > { %1747 = vmatprep.subr.bf16.mxu0 (!%p1579_p8), %v1859_v41  ;;  %vm1387_vm8 = vcmask (!%p1579_p8), 0  }
 0x353   : > { %v1308_v38 = vld [vmem:[%s2216_s0] sm:$0xff] (!%p1579_p8)  ;;  %v1309_v39 = vld [vmem:[%s2216_s0 + $0x8] sm:$0xff] (!%p1579_p8)  ;;  %v1310_v40 = vld [vmem:[%s2216_s0 + $0x10] sm:$0xff] (!%p1579_p8) }
 0x354   : > { %v1748_v42 = vpack.c.bf16 (!%p1579_p8), %v1309_v39, %v1308_v38  ;;  %v1311_v43 = vld [vmem:[%s2216_s0 + $0x18] sm:$0xff] (!%p1579_p8) }
 0x355   : > { %v1751_v45 = vpack.c.bf16 (!%p1579_p8), %v1311_v43, %v1310_v40 }
 0x417   : > { %v1124_v20 = vpop.f32.mrb[2].mxu1 }
 0x418   : > { %v1125_v21 = vadd.f32 %v1572_v19, %v1124_v20  ;;  %v1674_v22 = vpop.f32.mrb[3].mxu1 }
 0x41a   : > { %v1574_v23 = vmul.f32 -1.442695, %v1125_v21 }
 0x41c   : > { %1809 = vpow2.f32 %v1574_v23 }
 0x426   : > { %v1810_v24 = vpop.eup %1809 }
 0x427   : > { %v1131_v25 = vadd.f32 1.0, %v1810_v24 }
 0x429   : > { %1811 = vrcp.f32 %v1131_v25 }
 0x433   : > { %v1812_v26 = vpop.eup %1811 }
 0x434   : > { %v1134_v27 = vmul.f32 %v1812_v26, %v1125_v21 }
 0x436   : > { %1684 = vmatmul.mubr.msk.f32.vlgmr.msra.gmra.mrb[4].mxu0 %vm778_vm5, %v1134_v27 }
 0x437   : > { %1705 = vmatprep.mubr.msk.f32.mxu0 (!%p1579_p8), %vm1860_vm7, %v1861_v44  ;;  %1749 = vmatpush3.bf16.msra.mxu0 (!%p1579_p8), %v1748_v42 }
 0x438   : > { %1750 = vmatprep.subr.bf16.mxu0 (!%p1579_p8), %v1859_v41 }
 0x43b   : > { %1752 = vmatpush3.bf16.msra.mxu0 (!%p1579_p8), %v1751_v45 }
 0x509   : > { %v1215_v31 = vpop.f32.mrb[4].mxu0 }
 0x50a   : > { %v1216_v32 = vadd.f32 %v1575_v30, %v1215_v31  ;;  %v1685_v33 = vpop.f32.mrb[5].mxu0 }
 0x50c   : > { %1695 = vmatmul.mubr.msk.f32.vlgmr.msra.gmra.mrb[4].mxu1 %vm778_vm5, %v1216_v32 }
 0x5dc   : > { %1307 = sbr.rel (%p1579_p8) target bundleno = 1723 (0x6bb), region = 88 }
 0x5df   : > { %v1299_v35 = vpop.f32.mrb[4].mxu1 }
 0x5e0   : > { %v1300_v36 = vadd.f32 %v1577_v34, %v1299_v35  ;;  %v1696_v37 = vpop.f32.mrb[5].mxu1 }
 0x5e2   : > { %1303 = vst.msk [vmem:[#allocation2] sm:$0xff] %vm778_vm5, %v1300_v36  ;;  %v1314_v46 = vrot.slane (!%p1579_p8), %v1300_v36, 7 }
 0x5e4   : > { %1706 = vmatmul.mubr.msk.f32.vlgmr.msra.gmra.mrb[0].mxu0 %vm778_vm5, %v1314_v46 }
 0x6b7   : > { %v1383_v48 = vpop.f32.mrb[0].mxu0 }
 0x6b8   : > { %v1384_v49 = vadd.f32 %v1383_v48, %v1312_v47  ;;  %v1707_v50 = vpop.f32.mrb[1].mxu0 }
 0x6ba   : > { %1388 = vst.msk [vmem:[%s2217_s29] sm:$0x1] %vm1387_vm8, %v1384_v49 }
 0x6bb PF: > { %s2218_s27 = sld [smem:[#allocation7_spill]]  ;;  %s2219_s20 = sld [smem:[#allocation5_spill]] }
 0x6bc   : > { %s2220_s21 = sld [smem:[#allocation6_spill]]  ;;  %s2221_s22 = sld [smem:[#allocation8_spill]] }
 0x6bd   : > { %s2222_s23 = sld [smem:[#allocation9_spill]] }
 0x6c1   : > { %s27_s24 = sadd.s32 1, %s2218_s27  }
 0x6c2   : > { %p24_p9 = scmp.ge.s32.totalorder %s27_s24, 6  }
 0x6c4   :  { %26 = sbr.rel (!%p24_p9) target bundleno = 8 (0x8), region = 148 }

</bundles_post_ra>
